<compile_context>
chip_gen: v6e
topology: v6e:2x2x1
jax: 0.10.0
libtpu: 0.0.40
codegen_flags: <defaults>
</compile_context>

<pallas_src>
import functools

import jax
import jax.numpy as jnp
from jax.experimental import pallas as pl
from jax.experimental.pallas import tpu as pltpu


def _round_up(v, m):
    return ((v + m - 1) // m) * m


def _vmem_cap_bytes():
    """Generation-aware VMEM cap (leave headroom for compiler scratch)."""
    try:
        info = pltpu.get_tpu_info()
        cap = int(getattr(info, "vmem_capacity_bytes"))
        return max(32 * 1024 * 1024, int(cap * 0.85))
    except Exception:
        # Safe on every generation (v7x has 64 MiB per TensorCore).
        return 56 * 1024 * 1024


def _stochastic_kernel(x_ref, w_ref, b_ref, out_ref, *, split, min_std):
    # b_ref already has init_std_bias folded into its std columns.
    x = x_ref[...]
    y = jnp.dot(x, w_ref[...], preferred_element_type=jnp.float32) + b_ref[...]
    col = jax.lax.broadcasted_iota(jnp.int32, y.shape, 1)
    sp = jax.nn.softplus(y) + min_std            # f32 EUP math (free slot)
    out = jnp.where(col >= split, sp, y)         # std columns get softplus
    out_ref[...] = out.astype(out_ref.dtype)


def _deterministic_kernel(x_ref, w_ref, b_ref, out_ref):
    y = jnp.dot(x_ref[...], w_ref[...],
                preferred_element_type=jnp.float32) + b_ref[...]
    out_ref[...] = y.astype(out_ref.dtype)


def feature_extractor_forward(x, w, b, *, output_dim, stochastic=True,
                              init_std_bias=-5.0, min_std=1e-8,
                              block_b=16384, mxu_dtype=jnp.bfloat16,
                              out_dtype=None, use_pallas=None):
    """Forward pass of FeatureExtractor with `_net` = Linear(in_dim, latent_out).

    x: (B, input_dim), w: (input_dim, latent_out), b: (1, latent_out).
    mxu_dtype: dtype for the MXU-streamed operands (None keeps x/w dtype).
    use_pallas: True/False to force; None = auto (Pallas only for large B).
    """
    B, in_dim = x.shape
    latent = w.shape[1]
    if out_dtype is None:
        out_dtype = x.dtype
    b32 = b.astype(jnp.float32).reshape(1, latent)

    if use_pallas is None:
        # Below a few thousand rows the custom-call overhead dominates.
        use_pallas = B >= 4096

    if not use_pallas:
        y = jnp.dot(x, w, preferred_element_type=jnp.float32) + b32
        if stochastic:
            assert latent == 2 * output_dim
            mean = y[:, :output_dim]
            std = jax.nn.softplus(y[:, output_dim:] + init_std_bias) + min_std
            return mean.astype(out_dtype), std.astype(out_dtype)
        return y.astype(out_dtype)

    # ---- Pallas path -------------------------------------------------------
    if mxu_dtype is not None:
        x = x.astype(mxu_dtype)
        w = w.astype(mxu_dtype)

    # Batch tile: whole batch when small; otherwise a big 8-aligned tile with
    # at least 2 grid steps so the "parallel" axis can use both v7x TCs.
    if B <= 1024:
        tb = B
    else:
        n_tiles = max(2, pl.cdiv(B, block_b))
        tb = _round_up(pl.cdiv(B, n_tiles), 8)
    grid = (pl.cdiv(B, tb),)

    in_itemsize = jnp.dtype(x.dtype).itemsize
    out_itemsize = jnp.dtype(out_dtype).itemsize

    # Double-buffered x tile + resident W/b + double-buffered output tile.
    vmem_est = (2 * tb * in_dim * in_itemsize
                + in_dim * latent * in_itemsize
                + latent * 4
                + 2 * tb * latent * out_itemsize)
    vmem_limit = int(min(_vmem_cap_bytes(), max(32 * 1024 * 1024, 2 * vmem_est)))

    compiler_params = pltpu.CompilerParams(
        dimension_semantics=("parallel",),
        vmem_limit_bytes=vmem_limit,
    )

    if stochastic:
        assert latent == 2 * output_dim
        # Fold init_std_bias into the std bias columns (wrapper-side, free).
        b_fused = jnp.concatenate(
            [b32[:, :output_dim], b32[:, output_dim:] + init_std_bias], axis=1)

        kernel = functools.partial(
            _stochastic_kernel, split=int(output_dim), min_std=float(min_std))

        cost = pl.CostEstimate(
            flops=2 * B * in_dim * latent,
            transcendentals=B * latent,
            bytes_accessed=(B * in_dim * in_itemsize
                            + in_dim * latent * in_itemsize
                            + latent * 4
                            + B * latent * out_itemsize),
        )
        y = pl.pallas_call(
            kernel,
            out_shape=jax.ShapeDtypeStruct((B, latent), out_dtype),
            grid=grid,
            in_specs=[
                pl.BlockSpec((tb, in_dim), lambda i: (i, 0)),       # x tile
                pl.BlockSpec((in_dim, latent), lambda i: (0, 0)),   # W (resident)
                pl.BlockSpec((1, latent), lambda i: (0, 0)),        # bias (resident)
            ],
            out_specs=pl.BlockSpec((tb, latent), lambda i: (i, 0)),
            compiler_params=compiler_params,
            cost_estimate=cost,
        )(x, w, b_fused)
        # Free wrapper-side XLA slices (layout plumbing, not compute).
        return y[:, :output_dim], y[:, output_dim:]

    # Non-stochastic path: plain affine map.
    cost = pl.CostEstimate(
        flops=2 * B * in_dim * latent,
        transcendentals=0,
        bytes_accessed=(B * in_dim * in_itemsize
                        + in_dim * latent * in_itemsize
                        + latent * 4
                        + B * latent * out_itemsize),
    )
    return pl.pallas_call(
        _deterministic_kernel,
        out_shape=jax.ShapeDtypeStruct((B, latent), out_dtype),
        grid=grid,
        in_specs=[
            pl.BlockSpec((tb, in_dim), lambda i: (i, 0)),
            pl.BlockSpec((in_dim, latent), lambda i: (0, 0)),
            pl.BlockSpec((1, latent), lambda i: (0, 0)),
        ],
        out_specs=pl.BlockSpec((tb, latent), lambda i: (i, 0)),
        compiler_params=compiler_params,
        cost_estimate=cost,
    )(x, w, b32)


if __name__ == "__main__":
    # Small shapes consistent with the module: batch=8, input_dim=32, output_dim=16.
    batch = 8
    input_dim = 32
    output_dim = 16
    init_std_bias = -5.0
    min_std = 1e-8

    key = jax.random.PRNGKey(0)
    kx, kw, kb = jax.random.split(key, 3)

    x = jax.random.normal(kx, (batch, input_dim), dtype=jnp.float32)

    # --- stochastic=True path: latent_out = 2 * output_dim ---
    latent_out = 2 * output_dim
    w = jax.random.normal(kw, (input_dim, latent_out), dtype=jnp.float32) * 0.05
    b = jax.random.normal(kb, (1, latent_out), dtype=jnp.float32) * 0.05

    # plain-JAX reference
    y_ref = x @ w + b
    mean_ref = y_ref[:, :output_dim]
    std_ref = jax.nn.softplus(y_ref[:, output_dim:] + init_std_bias) + min_std

    # f32 MXU operands, kernel forced on (strict check)
    mean, std = feature_extractor_forward(
        x, w, b, output_dim=output_dim, stochastic=True,
        init_std_bias=init_std_bias, min_std=min_std,
        mxu_dtype=None, use_pallas=True)
    jax.block_until_ready((mean, std))
    assert jnp.allclose(mean, mean_ref, atol=1e-5, rtol=1e-5)
    assert jnp.allclose(std, std_ref, atol=1e-5, rtol=1e-5)

    # Default bf16 MXU operands (relaxed check; f32 accumulation + f32 softplus)
    mean_bf, std_bf = feature_extractor_forward(
        x, w, b, output_dim=output_dim, stochastic=True,
        init_std_bias=init_std_bias, min_std=min_std, use_pallas=True)
    jax.block_until_ready((mean_bf, std_bf))
    assert jnp.allclose(mean_bf, mean_ref, atol=2e-2, rtol=2e-2)
    assert jnp.allclose(std_bf, std_ref, atol=2e-2, rtol=5e-2)

    # Larger batch to exercise the batch grid / pipelining (>= 2 tiles).
    big_b = 2048
    xb = jax.random.normal(jax.random.PRNGKey(1), (big_b, input_dim),
                           dtype=jnp.float32)
    mean_b, std_b = feature_extractor_forward(
        xb, w, b, output_dim=output_dim, stochastic=True,
        init_std_bias=init_std_bias, min_std=min_std,
        mxu_dtype=None, use_pallas=True)
    jax.block_until_ready((mean_b, std_b))
    yb_ref = xb @ w + b
    assert jnp.allclose(mean_b, yb_ref[:, :output_dim], atol=1e-4, rtol=1e-4)
    assert jnp.allclose(
        std_b, jax.nn.softplus(yb_ref[:, output_dim:] + init_std_bias) + min_std,
        atol=1e-4, rtol=1e-4)

    # Auto path (small batch -> XLA fast path), same semantics.
    mean_a, std_a = feature_extractor_forward(
        x, w, b, output_dim=output_dim, stochastic=True,
        init_std_bias=init_std_bias, min_std=min_std)
    jax.block_until_ready((mean_a, std_a))
    assert jnp.allclose(mean_a, mean_ref, atol=1e-5, rtol=1e-5)
    assert jnp.allclose(std_a, std_ref, atol=1e-5, rtol=1e-5)

    # --- stochastic=False path: latent_out = output_dim ---
    w_d = w[:, :output_dim]
    b_d = b[:, :output_dim]
    y = feature_extractor_forward(
        x, w_d, b_d, output_dim=output_dim, stochastic=False,
        mxu_dtype=None, use_pallas=True)
    jax.block_until_ready(y)
    assert jnp.allclose(y, x @ w_d + b_d, atol=1e-5, rtol=1e-5)

    print("KERNEL_OK")
</pallas_src>

<mosaic_0001>
module attributes {stable_mosaic.version = 11 : i64} {
  func.func @_stochastic_kernel(%arg0: i32, %arg1: memref<8x32xf32, #tpu.memory_space<vmem>>, %arg2: memref<32x32xf32, #tpu.memory_space<vmem>>, %arg3: memref<1x32xf32, #tpu.memory_space<vmem>>, %arg4: memref<8x32xf32, #tpu.memory_space<vmem>>) attributes {dimension_semantics = [#tpu.dimension_semantics<parallel>], iteration_bounds = array<i64: 1>, scalar_prefetch = 0 : i64, scratch_operands = 0 : i64, tpu.core_type = #tpu.core_type<tc>, window_params = [{transform_indices = @transform_0, window_bounds = array<i64: 8, 32>}, {pipeline_mode = #tpu.pipeline_mode<synchronous>, transform_indices = @transform_1, window_bounds = array<i64: 32, 32>}, {pipeline_mode = #tpu.pipeline_mode<synchronous>, transform_indices = @transform_2, window_bounds = array<i64: 1, 32>}, {transform_indices = @transform_3, window_bounds = array<i64: 8, 32>}]} {
    %c0 = arith.constant 0 : index
    %c0_0 = arith.constant 0 : index
    %0 = vector.load %arg1[%c0, %c0_0] : memref<8x32xf32, #tpu.memory_space<vmem>>, vector<8x32xf32>
    %c0_1 = arith.constant 0 : index
    %c0_2 = arith.constant 0 : index
    %1 = vector.load %arg2[%c0_1, %c0_2] : memref<32x32xf32, #tpu.memory_space<vmem>>, vector<32x32xf32>
    %cst = arith.constant dense<0.000000e+00> : vector<8x32xf32>
    %2 = tpu.matmul %0, %1, %cst {dimension_numbers = #tpu.dot_dimension_numbers<[1], [0], [0], [1], [0, 0, 1, 1], [], []>} : vector<8x32xf32>, vector<32x32xf32>, vector<8x32xf32> -> vector<8x32xf32>
    %c0_3 = arith.constant 0 : index
    %c0_4 = arith.constant 0 : index
    %3 = vector.load %arg3[%c0_3, %c0_4] : memref<1x32xf32, #tpu.memory_space<vmem>>, vector<1x32xf32>
    %4 = vector.broadcast %3 : vector<1x32xf32> to vector<8x32xf32>
    %5 = arith.addf %2, %4 : vector<8x32xf32>
    %6 = tpu.iota {dimensions = array<i32: 1>} : vector<8x32xi32>
    %cst_5 = arith.constant 0.000000e+00 : f32
    %7 = vector.broadcast %cst_5 : f32 to vector<8x32xf32>
    %8 = arith.maximumf %5, %7 : vector<8x32xf32>
    %9 = vector.broadcast %cst_5 : f32 to vector<8x32xf32>
    %10 = arith.subf %5, %9 : vector<8x32xf32>
    %11 = arith.cmpf one, %10, %10 : vector<8x32xf32>
    %12 = vector.broadcast %cst_5 : f32 to vector<8x32xf32>
    %13 = arith.addf %5, %12 : vector<8x32xf32>
    %14 = math.absf %10 : vector<8x32xf32>
    %cst_6 = arith.constant 0.000000e+00 : f32
    %15 = vector.broadcast %cst_6 : f32 to vector<8x32xf32>
    %16 = arith.subf %15, %14 : vector<8x32xf32>
    %17 = math.exp %16 : vector<8x32xf32>
    %18 = math.log1p %17 : vector<8x32xf32>
    %19 = arith.addf %8, %18 : vector<8x32xf32>
    %20 = arith.select %11, %13, %19 : vector<8x32xi1>, vector<8x32xf32>
    %cst_7 = arith.constant 9.99999993E-9 : f32
    %21 = vector.broadcast %cst_7 : f32 to vector<8x32xf32>
    %22 = arith.addf %20, %21 : vector<8x32xf32>
    %c16_i32 = arith.constant 16 : i32
    %23 = vector.broadcast %c16_i32 : i32 to vector<8x32xi32>
    %24 = arith.cmpi sge, %6, %23 : vector<8x32xi32>
    %25 = arith.select %24, %22, %5 : vector<8x32xi1>, vector<8x32xf32>
    %c0_8 = arith.constant 0 : index
    %c0_9 = arith.constant 0 : index
    %26 = vector.load %arg4[%c0_8, %c0_9] : memref<8x32xf32, #tpu.memory_space<vmem>>, vector<8x32xf32>
    tpu.vector_store %arg4[%c0_8, %c0_9], %25 {strides = array<i32>} : memref<8x32xf32, #tpu.memory_space<vmem>>, vector<8x32xf32>,
    return
  }
  func.func @transform_0(%arg0: i32) -> (i32, i32) {
    %c0_i32 = arith.constant 0 : i32
    %c0_i32_0 = arith.constant 0 : i32
    return %arg0, %c0_i32 : i32, i32
  }
  func.func @transform_1(%arg0: i32) -> (i32, i32) {
    %c0_i32 = arith.constant 0 : i32
    %c0_i32_0 = arith.constant 0 : i32
    %c0_i32_1 = arith.constant 0 : i32
    return %c0_i32, %c0_i32_0 : i32, i32
  }
  func.func @transform_2(%arg0: i32) -> (i32, i32) {
    %c0_i32 = arith.constant 0 : i32
    %c0_i32_0 = arith.constant 0 : i32
    %c0_i32_1 = arith.constant 0 : i32
    return %c0_i32, %c0_i32_0 : i32, i32
  }
  func.func @transform_3(%arg0: i32) -> (i32, i32) {
    %c0_i32 = arith.constant 0 : i32
    %c0_i32_0 = arith.constant 0 : i32
    return %arg0, %c0_i32 : i32, i32
  }
}

</mosaic_0001>

<bundles_post_ra>
// kernel: tpu_custom_call.1
= control target key start
LH: loop header
LB: loop body
LE: loop exit
PB: predicated region body
PF: predicated region fallthrough
CT: control target
= control target key end

     0   :  { %8 = vsyncpa [#allocation3], 0  ;;  %s303_s0 = inlined_call_operand.hbm [shape: f32[8,32], index: 0, kind: input, shape index: {}]   ;;  %s304_s1 = inlined_call_operand.hbm [shape: f32[32,32], index: 1, kind: input, shape index: {}]   ;;  %s305_s2 = inlined_call_operand.vmem [shape: f32[1,32], index: 2, kind: input, shape index: {}]   ;;  %s306_s3 = inlined_call_operand.hbm [shape: f32[8,32], index: 3, kind: output, shape index: {}]  }
   0x1   :  { %9 = vsyncpa [#allocation6], 0 }
   0x2   :  { %10 = vsyncpa [#allocation4], 0  ;;  %s262_s12 = smov [#allocation2]   ;;  %s263_s14 = smov [#allocation5]  }
   0x3   :  { %s17_s13 = sshll.u32 %s262_s12, 4  ;;  %s26_s15 = sshll.u32 %s263_s14, 4  ;;  %s18_s13 = int_to_ptr.vmem [resolvable:$true] %s17_s13  ;;  %s27_s15 = int_to_ptr.vmem [resolvable:$true] %s26_s15 }
   0x4   :  { %s204_s16 = scalar_lea.vmem %s18_s13, 128  ;;  %p209_p1 = scmp.lt.s32.totalorder %s18_s13, %s18_s13 }
   0x5   :  { %p205_p0 = scmp.ne.s32.totalorder %s18_s13, %s204_s16  ;;  %p210_p2 = scmp.lt.s32.totalorder %s204_s16, %s204_s16 }
   0x7   :  { %p211_p3 = por %p210_p2, %p209_p1 }
   0x9   :  { %p212_p4 = pnand %p211_p3, %p205_p0 }
   0xb   :  { %215 = shalt.err (!%p212_p4)
}
   0xc   :  { %20 = dma.hbm_to_vmem [thread:$0]  %s303_s0, 128, %s18_s13, [#allocation3]  }
   0xd   :  { %s224_s19 = scalar_lea.vmem %s27_s15, 512  ;;  %p229_p6 = scmp.lt.s32.totalorder %s27_s15, %s27_s15 }
   0xe   :  { %p225_p5 = scmp.ne.s32.totalorder %s27_s15, %s224_s19  ;;  %p230_p7 = scmp.lt.s32.totalorder %s224_s19, %s224_s19 }
  0x10   :  { %p231_p8 = por %p230_p7, %p229_p6 }
  0x12   :  { %p232_p9 = pnand %p231_p8, %p225_p5 }
  0x14   :  { %235 = shalt.err (!%p232_p9)
}
  0x15   :  { %s264_s20 = smov 128   ;;  %s265_s21 = smov 8  }
  0x16   :  { %32 = dma.hbm_to_vmem [thread:$0]  %s304_s1, 512, %s27_s15, [#allocation6], %s264_s20, %s264_s20, %s265_s21  }
  0x17   :  { %256 = dma.done.wait [#allocation3], 128  }
  0x18   :  { %257 = vsyncadd [#allocation3], 4294967168 }
  0x19   :  { %258 = dma.done.wait [#allocation6], 512  }
  0x1a   :  { %259 = vsyncadd [#allocation6], 4294966784  ;;  %v266_v0 = vmov 0.0   ;;  %vm267_vm0 = vmmov 0   ;;  %v45_v1 = vld [vmem:[#allocation5 + $0x18] sm:$0xff]  ;;  %v44_v2 = vld [vmem:[#allocation5 + $0x10] sm:$0xff]  ;;  %v127_v17 = vlaneseq }
  0x1b   :  { %174 = vmatprep.subr.mxu0 %v266_v0  ;;  %182 = vmatprep.mubr.msk.f32.mxu0 %vm267_vm0, %v266_v0  ;;  %v43_v3 = vld [vmem:[#allocation5 + $0x8] sm:$0xff]  ;;  %v42_v4 = vld [vmem:[#allocation5] sm:$0xff]  ;;  %v41_v5 = vld [vmem:[#allocation2] sm:$0xff]  ;;  %vm53_vm1 = vcmask 261120  }
  0x1c   :  { %175 = vmatpush3.msra.mxu0 %v45_v1  ;;  %v167_v6 = vld [vmem:[%s305_s2] ss:$0 sm:$0xff]  ;;  %v128_v23 = vand.u32 127, %v127_v17  ;;  %s268_s2 = smov [#allocation7]  }
  0x1d   :  { %176 = vmatprep.subr.mxu0 %v266_v0  ;;  %s157_s24 = sshll.u32 %s268_s2, 4  ;;  %s158_s24 = int_to_ptr.vmem [resolvable:$true] %s157_s24 }
  0x1e   :  { %177 = vmatpush3.msra.mxu0 %v44_v2  ;;  %vm148_vm4 = vcmp.ge.s32.totalorder %v128_v23, 16  ;;  %s236_s25 = scalar_lea.vmem %s158_s24, 128  ;;  %p241_p11 = scmp.lt.s32.totalorder %s158_s24, %s158_s24 }
  0x1f   :  { %178 = vmatprep.subr.mxu0 %v266_v0  ;;  %p237_p10 = scmp.ne.s32.totalorder %s158_s24, %s236_s25  ;;  %p242_p12 = scmp.lt.s32.totalorder %s236_s25, %s236_s25 }
  0x20   :  { %179 = vmatpush3.msra.mxu0 %v43_v3 }
  0x21   :  { %180 = vmatprep.subr.mxu0 %v266_v0  ;;  %p243_p13 = por %p242_p12, %p241_p11 }
  0x22   :  { %181 = vmatpush3.msra.mxu0 %v42_v4 }
  0x23   :  { %183 = vmatmul.mubr.msk.f32.vlgmr.msra.gmra.mxu0 %vm53_vm1, %v41_v5  ;;  %p244_p0 = pnand %p243_p13, %p237_p10 }
  0xe3   :  { %v123_v7 = vpop.f32.mrf.mxu0 }
  0xe4   :  { %v124_v8 = vadd.f32 %v167_v6, %v123_v7 }
  0xe5   :  { %v184_v9 = vpop.f32.mrf.mxu0 }
  0xe6   :  { %v132_v10 = vand.u32 2147483647, %v124_v8  ;;  %v129_v22 = vmax.f32 %v124_v8, 0.0  ;;  %vm130_vm3 = vcmp.ne.f32.partialorder %v124_v8, %v124_v8 }
  0xe8   :  { %v133_v11 = vsub.f32 0.0, %v132_v10 }
  0xea   :  { %v134_v12 = vmul.f32 1.442695, %v133_v11 }
  0xec   :  { %192 = vpow2.f32 %v134_v12 }
  0xf9   :  { %v193_v13 = vpop.eup %192 }
  0xfa   :  { %v136_v14 = vadd.f32 1.0, %v193_v13  ;;  %v139_v15 = vmul.f32 -0.5, %v193_v13  ;;  %v142_v18 = vand.u32 2147483647, %v193_v13 }
  0xfc   :  { %194 = vlog2.f32 %v136_v14  ;;  %v140_v16 = vadd.f32 1.0, %v139_v15  ;;  %vm143_vm2 = vcmp.lt.f32.partialorder %v142_v18, 0.0004427343 }
  0xfe   :  { %v141_v21 = vmul.f32 %v193_v13, %v140_v16 }
 0x109   :  { %v195_v19 = vpop.eup %194 }
 0x10a   :  { %v138_v20 = vmul.f32 0.6931472, %v195_v19 }
 0x10c   :  { %v144_v24 = vsel %vm143_vm2, %v141_v21, %v138_v20 }
 0x10d   :  { %v145_v25 = vadd.f32 %v144_v24, %v129_v22 }
 0x10f   :  { %v146_v26 = vsel %vm130_vm3, %v124_v8, %v145_v25 }
 0x110   :  { %v147_v27 = vadd.f32 1e-08, %v146_v26 }
 0x112   :  { %v149_v28 = vsel %vm148_vm4, %v147_v27, %v124_v8 }
 0x113   :  { %150 = vst.msk [vmem:[#allocation7] sm:$0xff] %vm53_vm1, %v149_v28 }
 0x114   :  { %247 = shalt.err (!%p244_p0)
}
 0x115   :  { %160 = dma.vmem_to_hbm [thread:$0]  %s158_s24, 128, %s306_s3, [#allocation4]  }
 0x116   :  { %260 = dma.done.wait [#allocation4], 128  }
 0x117   :  { %261 = vsyncadd [#allocation4], 4294967168 }
 0x118   :  { %164 = vsyncpa [#allocation3], 1 }
 0x119   :  { %165 = vsyncpa [#allocation6], 1 }
 0x11a   :  { %166 = vsyncpa [#allocation4], 1 }

</bundles_post_ra>
